<compile_context>
chip_gen: v5e
topology: v5e:2x2
jax: 0.10.0
libtpu: 0.0.40
codegen_flags: <defaults>
</compile_context>

<pallas_src>
import functools

import jax
import jax.numpy as jnp
from jax.experimental import pallas as pl
from jax.experimental.pallas import tpu as pltpu

LANE = 128  # TPU lane width; all feature dims are zero-padded up to this.


def _batchnorm_train(h, gamma, beta, eps=1e-5):
    mean = jnp.mean(h, axis=0, keepdims=True)
    var = jnp.mean((h - mean) ** 2, axis=0, keepdims=True)  # biased, like PyTorch
    return (h - mean) * jax.lax.rsqrt(var + eps) * gamma + beta


def simplenet_kernel(x_ref, w_ref, v_ref, o_ref):
    """x_ref: [B,128] f32, w_ref: [2,128,128] f32, v_ref: [8,128] f32,
    o_ref: [B,128] f32 (sigmoid result broadcast across lanes)."""
    x = x_ref[...]                 # [B, 128]

    w1 = w_ref[0]                  # [128, 128] (rows >= input_size are zero)
    w2 = w_ref[1]                  # [128, 128]
    b1  = v_ref[0:1, :]            # [1, 128]
    g1  = v_ref[1:2, :]
    be1 = v_ref[2:3, :]
    b2  = v_ref[3:4, :]
    g2  = v_ref[4:5, :]
    be2 = v_ref[5:6, :]
    w3  = v_ref[6:7, :]            # final layer weights as a lane row
    b3  = v_ref[7:8, :]            # final bias broadcast across all lanes

    # Linear(input, h1) -> ReLU -> BatchNorm1d -> ReLU
    h = jnp.dot(x, w1, preferred_element_type=jnp.float32) + b1
    h = jnp.maximum(h, 0.0)
    h = _batchnorm_train(h, g1, be1)
    h = jnp.maximum(h, 0.0)

    # Linear(h1, h2) -> ReLU -> BatchNorm1d -> ReLU
    h = jnp.dot(h, w2, preferred_element_type=jnp.float32) + b2
    h = jnp.maximum(h, 0.0)
    h = _batchnorm_train(h, g2, be2)
    h = jnp.maximum(h, 0.0)

    # Final Linear(h2, 1): VPU multiply + lane (XLU) reduction instead of an
    # N=1 MXU matmul. Padded lanes of h and w3 are exactly zero.
    z = jnp.sum(h * w3, axis=-1, keepdims=True)           # [B, 1]
    # Lane-dense store: broadcast the per-row scalar across all 128 lanes.
    o_ref[...] = jax.nn.sigmoid(z + b3)                   # [B, 128]


@jax.jit
def simplenet_forward(x, w_slab, v_slab):
    B, f_in = x.shape
    x_pad = jnp.zeros((B, LANE), jnp.float32).at[:, :f_in].set(x)
    vmem = pl.BlockSpec(memory_space=pltpu.MemorySpace.VMEM)
    out = pl.pallas_call(
        simplenet_kernel,
        out_shape=jax.ShapeDtypeStruct((B, LANE), jnp.float32),
        in_specs=[vmem, vmem, vmem],
        out_specs=vmem,
        cost_estimate=pl.CostEstimate(
            flops=2 * B * (2 * LANE * LANE + LANE),
            transcendentals=B * LANE,
            bytes_accessed=4 * (B * LANE + 2 * LANE * LANE + 8 * LANE + B * LANE),
        ),
    )(x_pad, w_slab, v_slab)
    return out[:, :1]  # slice the lane-dense slab back to (B, 1)


def init_params(key, input_size, architecture):
    """Deterministic PyTorch-style init: U(-1/sqrt(fan_in), 1/sqrt(fan_in)).
    Weights are stored pre-transposed as [F_in, F_out]."""
    dims = [input_size] + list(architecture) + [1]
    params = []
    keys = jax.random.split(key, 2 * len(dims))
    ki = 0
    for li, (n_in, n_out) in enumerate(zip(dims[:-1], dims[1:])):
        bound = 1.0 / jnp.sqrt(n_in)
        w = jax.random.uniform(keys[ki], (n_in, n_out), jnp.float32, -bound, bound)
        ki += 1
        b = jax.random.uniform(keys[ki], (1, n_out), jnp.float32, -bound, bound)
        ki += 1
        params.append(w)
        params.append(b)
        if li < len(architecture):  # BatchNorm after every layer except the last
            params.append(jnp.ones((1, n_out), jnp.float32))   # gamma
            params.append(jnp.zeros((1, n_out), jnp.float32))  # beta
    return tuple(params)


def pack_params(params, input_size, architecture):
    """Pad to 128 lanes and pack into two contiguous VMEM slabs.

    Returns:
      w_slab: [2, 128, 128] f32 -- zero-padded, pre-transposed hidden weights.
      v_slab: [8, 128]      f32 -- rows: b1,g1,be1,b2,g2,be2,w3_row,b3_row.
    """
    # TODO(synk): specialized to exactly two hidden layers (architecture == [h1, h2]).
    w1, b1, g1, be1, w2, b2, g2, be2, w3, b3 = params
    h1, h2 = architecture
    assert input_size <= LANE and h1 <= LANE and h2 <= LANE

    w1p = jnp.zeros((LANE, LANE), jnp.float32).at[:input_size, :h1].set(w1)
    w2p = jnp.zeros((LANE, LANE), jnp.float32).at[:h1, :h2].set(w2)
    w_slab = jnp.stack([w1p, w2p])                       # [2, 128, 128]

    def row(v, n):
        return jnp.zeros((LANE,), jnp.float32).at[:n].set(v.reshape(-1))

    v_slab = jnp.stack([
        row(b1, h1), row(g1, h1), row(be1, h1),
        row(b2, h2), row(g2, h2), row(be2, h2),
        row(w3, h2),
        jnp.full((LANE,), b3.reshape(()).astype(jnp.float32)),
    ])                                                   # [8, 128]
    return w_slab, v_slab


def reference_forward(x, params):
    """Pure-JAX reference on the original (unpadded) parameters."""
    (w1, b1, g1, be1, w2, b2, g2, be2, w3, b3) = params
    h = jnp.maximum(x @ w1 + b1, 0.0)
    h = jnp.maximum(_batchnorm_train(h, g1, be1), 0.0)
    h = jnp.maximum(h @ w2 + b2, 0.0)
    h = jnp.maximum(_batchnorm_train(h, g2, be2), 0.0)
    return jax.nn.sigmoid(h @ w3 + b3)


if __name__ == "__main__":
    key = jax.random.PRNGKey(0)
    k_x, k_p = jax.random.split(key)

    B = 8
    input_size = 32
    architecture = [64, 64]

    x = jax.random.normal(k_x, (B, input_size), jnp.float32)
    params = init_params(k_p, input_size, architecture)
    w_slab, v_slab = pack_params(params, input_size, architecture)

    out = simplenet_forward(x, w_slab, v_slab)
    jax.block_until_ready(out)

    ref = reference_forward(x, params)
    assert out.shape == (B, 1)
    assert jnp.allclose(out, ref, atol=1e-5, rtol=1e-5), "mismatch vs JAX reference"

    print("KERNEL_OK")
</pallas_src>

<mosaic_0001>
module attributes {stable_mosaic.version = 11 : i64} {
  func.func @simplenet_kernel(%arg0: memref<8x128xf32, #tpu.memory_space<vmem>>, %arg1: memref<2x128x128xf32, #tpu.memory_space<vmem>>, %arg2: memref<8x128xf32, #tpu.memory_space<vmem>>, %arg3: memref<8x128xf32, #tpu.memory_space<vmem>>) attributes {dimension_semantics = [], scalar_prefetch = 0 : i64, scratch_operands = 0 : i64, tpu.core_type = #tpu.core_type<tc>} {
    %c0 = arith.constant 0 : index
    %c0_0 = arith.constant 0 : index
    %0 = vector.load %arg0[%c0, %c0_0] : memref<8x128xf32, #tpu.memory_space<vmem>>, vector<8x128xf32>
    %c0_1 = arith.constant 0 : index
    %c0_2 = arith.constant 0 : index
    %c0_3 = arith.constant 0 : index
    %1 = vector.load %arg1[%c0_1, %c0_2, %c0_3] : memref<2x128x128xf32, #tpu.memory_space<vmem>>, vector<1x128x128xf32>
    %2 = vector.shape_cast %1 : vector<1x128x128xf32> to vector<128x128xf32>
    %c1 = arith.constant 1 : index
    %c0_4 = arith.constant 0 : index
    %c0_5 = arith.constant 0 : index
    %3 = vector.load %arg1[%c1, %c0_4, %c0_5] : memref<2x128x128xf32, #tpu.memory_space<vmem>>, vector<1x128x128xf32>
    %4 = vector.shape_cast %3 : vector<1x128x128xf32> to vector<128x128xf32>
    %c0_6 = arith.constant 0 : index
    %c0_7 = arith.constant 0 : index
    %5 = vector.load %arg2[%c0_6, %c0_7] : memref<8x128xf32, #tpu.memory_space<vmem>>, vector<1x128xf32>
    %c1_8 = arith.constant 1 : index
    %c0_9 = arith.constant 0 : index
    %6 = vector.load %arg2[%c1_8, %c0_9] : memref<8x128xf32, #tpu.memory_space<vmem>>, vector<1x128xf32>
    %c2 = arith.constant 2 : index
    %c0_10 = arith.constant 0 : index
    %7 = vector.load %arg2[%c2, %c0_10] : memref<8x128xf32, #tpu.memory_space<vmem>>, vector<1x128xf32>
    %c3 = arith.constant 3 : index
    %c0_11 = arith.constant 0 : index
    %8 = vector.load %arg2[%c3, %c0_11] : memref<8x128xf32, #tpu.memory_space<vmem>>, vector<1x128xf32>
    %c4 = arith.constant 4 : index
    %c0_12 = arith.constant 0 : index
    %9 = vector.load %arg2[%c4, %c0_12] : memref<8x128xf32, #tpu.memory_space<vmem>>, vector<1x128xf32>
    %c5 = arith.constant 5 : index
    %c0_13 = arith.constant 0 : index
    %10 = vector.load %arg2[%c5, %c0_13] : memref<8x128xf32, #tpu.memory_space<vmem>>, vector<1x128xf32>
    %c6 = arith.constant 6 : index
    %c0_14 = arith.constant 0 : index
    %11 = vector.load %arg2[%c6, %c0_14] : memref<8x128xf32, #tpu.memory_space<vmem>>, vector<1x128xf32>
    %c7 = arith.constant 7 : index
    %c0_15 = arith.constant 0 : index
    %12 = vector.load %arg2[%c7, %c0_15] : memref<8x128xf32, #tpu.memory_space<vmem>>, vector<1x128xf32>
    %cst = arith.constant dense<0.000000e+00> : vector<8x128xf32>
    %13 = tpu.matmul %0, %2, %cst {dimension_numbers = #tpu.dot_dimension_numbers<[1], [0], [0], [1], [0, 0, 1, 1], [], []>} : vector<8x128xf32>, vector<128x128xf32>, vector<8x128xf32> -> vector<8x128xf32>
    %14 = vector.broadcast %5 : vector<1x128xf32> to vector<8x128xf32>
    %15 = arith.addf %13, %14 : vector<8x128xf32>
    %cst_16 = arith.constant 0.000000e+00 : f32
    %16 = vector.broadcast %cst_16 : f32 to vector<8x128xf32>
    %17 = arith.maximumf %15, %16 : vector<8x128xf32>
    %cst_17 = arith.constant dense<0.000000e+00> : vector<128xf32>
    %18 = vector.multi_reduction <add>, %17, %cst_17 [0] : vector<8x128xf32> to vector<128xf32>
    %19 = vector.shape_cast %18 : vector<128xf32> to vector<1x128xf32>
    %cst_18 = arith.constant 8.000000e+00 : f32
    %20 = vector.broadcast %cst_18 : f32 to vector<1x128xf32>
    %21 = arith.divf %19, %20 : vector<1x128xf32>
    %22 = vector.broadcast %21 : vector<1x128xf32> to vector<8x128xf32>
    %23 = arith.subf %17, %22 : vector<8x128xf32>
    %24 = arith.mulf %23, %23 : vector<8x128xf32>
    %cst_19 = arith.constant dense<0.000000e+00> : vector<128xf32>
    %25 = vector.multi_reduction <add>, %24, %cst_19 [0] : vector<8x128xf32> to vector<128xf32>
    %26 = vector.shape_cast %25 : vector<128xf32> to vector<1x128xf32>
    %cst_20 = arith.constant 8.000000e+00 : f32
    %27 = vector.broadcast %cst_20 : f32 to vector<1x128xf32>
    %28 = arith.divf %26, %27 : vector<1x128xf32>
    %29 = vector.broadcast %21 : vector<1x128xf32> to vector<8x128xf32>
    %30 = arith.subf %17, %29 : vector<8x128xf32>
    %cst_21 = arith.constant 9.99999974E-6 : f32
    %31 = vector.broadcast %cst_21 : f32 to vector<1x128xf32>
    %32 = arith.addf %28, %31 : vector<1x128xf32>
    %33 = math.rsqrt %32 : vector<1x128xf32>
    %34 = vector.broadcast %33 : vector<1x128xf32> to vector<8x128xf32>
    %35 = arith.mulf %30, %34 : vector<8x128xf32>
    %36 = vector.broadcast %6 : vector<1x128xf32> to vector<8x128xf32>
    %37 = arith.mulf %35, %36 : vector<8x128xf32>
    %38 = vector.broadcast %7 : vector<1x128xf32> to vector<8x128xf32>
    %39 = arith.addf %37, %38 : vector<8x128xf32>
    %cst_22 = arith.constant 0.000000e+00 : f32
    %40 = vector.broadcast %cst_22 : f32 to vector<8x128xf32>
    %41 = arith.maximumf %39, %40 : vector<8x128xf32>
    %cst_23 = arith.constant dense<0.000000e+00> : vector<8x128xf32>
    %42 = tpu.matmul %41, %4, %cst_23 {dimension_numbers = #tpu.dot_dimension_numbers<[1], [0], [0], [1], [0, 0, 1, 1], [], []>} : vector<8x128xf32>, vector<128x128xf32>, vector<8x128xf32> -> vector<8x128xf32>
    %43 = vector.broadcast %8 : vector<1x128xf32> to vector<8x128xf32>
    %44 = arith.addf %42, %43 : vector<8x128xf32>
    %cst_24 = arith.constant 0.000000e+00 : f32
    %45 = vector.broadcast %cst_24 : f32 to vector<8x128xf32>
    %46 = arith.maximumf %44, %45 : vector<8x128xf32>
    %cst_25 = arith.constant dense<0.000000e+00> : vector<128xf32>
    %47 = vector.multi_reduction <add>, %46, %cst_25 [0] : vector<8x128xf32> to vector<128xf32>
    %48 = vector.shape_cast %47 : vector<128xf32> to vector<1x128xf32>
    %cst_26 = arith.constant 8.000000e+00 : f32
    %49 = vector.broadcast %cst_26 : f32 to vector<1x128xf32>
    %50 = arith.divf %48, %49 : vector<1x128xf32>
    %51 = vector.broadcast %50 : vector<1x128xf32> to vector<8x128xf32>
    %52 = arith.subf %46, %51 : vector<8x128xf32>
    %53 = arith.mulf %52, %52 : vector<8x128xf32>
    %cst_27 = arith.constant dense<0.000000e+00> : vector<128xf32>
    %54 = vector.multi_reduction <add>, %53, %cst_27 [0] : vector<8x128xf32> to vector<128xf32>
    %55 = vector.shape_cast %54 : vector<128xf32> to vector<1x128xf32>
    %cst_28 = arith.constant 8.000000e+00 : f32
    %56 = vector.broadcast %cst_28 : f32 to vector<1x128xf32>
    %57 = arith.divf %55, %56 : vector<1x128xf32>
    %58 = vector.broadcast %50 : vector<1x128xf32> to vector<8x128xf32>
    %59 = arith.subf %46, %58 : vector<8x128xf32>
    %cst_29 = arith.constant 9.99999974E-6 : f32
    %60 = vector.broadcast %cst_29 : f32 to vector<1x128xf32>
    %61 = arith.addf %57, %60 : vector<1x128xf32>
    %62 = math.rsqrt %61 : vector<1x128xf32>
    %63 = vector.broadcast %62 : vector<1x128xf32> to vector<8x128xf32>
    %64 = arith.mulf %59, %63 : vector<8x128xf32>
    %65 = vector.broadcast %9 : vector<1x128xf32> to vector<8x128xf32>
    %66 = arith.mulf %64, %65 : vector<8x128xf32>
    %67 = vector.broadcast %10 : vector<1x128xf32> to vector<8x128xf32>
    %68 = arith.addf %66, %67 : vector<8x128xf32>
    %cst_30 = arith.constant 0.000000e+00 : f32
    %69 = vector.broadcast %cst_30 : f32 to vector<8x128xf32>
    %70 = arith.maximumf %68, %69 : vector<8x128xf32>
    %71 = vector.broadcast %11 : vector<1x128xf32> to vector<8x128xf32>
    %72 = arith.mulf %70, %71 : vector<8x128xf32>
    %cst_31 = arith.constant dense<0.000000e+00> : vector<8xf32>
    %73 = vector.multi_reduction <add>, %72, %cst_31 [1] : vector<8x128xf32> to vector<8xf32>
    %74 = vector.shape_cast %73 : vector<8xf32> to vector<8x1xf32>
    %75 = vector.broadcast %74 : vector<8x1xf32> to vector<8x128xf32>
    %76 = vector.broadcast %12 : vector<1x128xf32> to vector<8x128xf32>
    %77 = arith.addf %75, %76 : vector<8x128xf32>
    %78 = arith.negf %77 : vector<8x128xf32>
    %79 = math.exp %78 : vector<8x128xf32>
    %cst_32 = arith.constant 1.000000e+00 : f32
    %80 = vector.broadcast %cst_32 : f32 to vector<8x128xf32>
    %81 = arith.addf %80, %79 : vector<8x128xf32>
    %82 = arith.divf %80, %81 : vector<8x128xf32>
    %c0_33 = arith.constant 0 : index
    %c0_34 = arith.constant 0 : index
    %83 = vector.load %arg3[%c0_33, %c0_34] : memref<8x128xf32, #tpu.memory_space<vmem>>, vector<8x128xf32>
    tpu.vector_store %arg3[%c0_33, %c0_34], %82 {strides = array<i32>} : memref<8x128xf32, #tpu.memory_space<vmem>>, vector<8x128xf32>,
    return
  }
}

</mosaic_0001>

<bundles_post_ra>
// kernel: simplenet_forward.1
= control target key start
LH: loop header
LB: loop body
LE: loop exit
PB: predicated region body
PF: predicated region fallthrough
CT: control target
= control target key end

     0   :  { %8 = vsyncpa [#allocation3], 0  ;;  %s269_s15 = smov [#allocation2]   ;;  %s270_s17 = smov 128   ;;  %s332_s0 = inlined_call_operand.vmem [shape: f32[8,128], index: 0, kind: input, shape index: {}]   ;;  %s333_s1 = inlined_call_operand.hbm [shape: f32[2,128,128], index: 1, kind: input, shape index: {}]   ;;  %s334_s2 = inlined_call_operand.vmem [shape: f32[8,128], index: 2, kind: input, shape index: {}]   ;;  %s335_s3 = inlined_call_operand.vmem [shape: f32[8,128], index: 3, kind: output, shape index: {}]  }
   0x1   :  { %s15_s14 = sshll.u32 %s333_s1, 4  ;;  %s17_s16 = sshll.u32 %s269_s15, 4  ;;  %s16_s14 = int_to_ptr.hbm [resolvable:$true] %s15_s14  ;;  %s18_s16 = int_to_ptr.vmem [resolvable:$true] %s17_s16 }
   0x2   :  { %s271_s18 = smov 8  }
   0x3   :  { %23 = dma.hbm_to_vmem [thread:$0]  %s16_s14, 4096, %s18_s16, [#allocation3], %s270_s17, %s270_s17, %s271_s18  }
   0x4   :  { %267 = dma.done.wait [#allocation3], 4096  }
   0x5   :  { %268 = vsyncadd [#allocation3], 4294963200  ;;  %v46_v0 = vld [vmem:[#allocation2 + $0x78] sm:$0xff]  ;;  %v45_v1 = vld [vmem:[#allocation2 + $0x70] sm:$0xff]  ;;  %v272_v17 = vmov 8.0  }
   0x6   :  { %73 = vmatpush.msra.mxu0 %v46_v0  ;;  %v44_v2 = vld [vmem:[#allocation2 + $0x68] sm:$0xff]  ;;  %v43_v3 = vld [vmem:[#allocation2 + $0x60] sm:$0xff]  ;;  %v42_v4 = vld [vmem:[#allocation2 + $0x58] sm:$0xff]  ;;  %233 = vrcp.f32 %v272_v17 }
   0x7   :  { %v41_v5 = vld [vmem:[#allocation2 + $0x50] sm:$0xff]  ;;  %v40_v6 = vld [vmem:[#allocation2 + $0x48] sm:$0xff]  ;;  %v39_v7 = vld [vmem:[#allocation2 + $0x40] sm:$0xff] }
   0x8   :  { %74 = vmatpush.msra.mxu0 %v45_v1  ;;  %v38_v8 = vld [vmem:[#allocation2 + $0x38] sm:$0xff]  ;;  %v37_v9 = vld [vmem:[#allocation2 + $0x30] sm:$0xff]  ;;  %v36_v10 = vld [vmem:[#allocation2 + $0x28] sm:$0xff] }
   0x9   :  { %v35_v11 = vld [vmem:[#allocation2 + $0x20] sm:$0xff]  ;;  %v34_v12 = vld [vmem:[#allocation2 + $0x18] sm:$0xff]  ;;  %v33_v13 = vld [vmem:[#allocation2 + $0x10] sm:$0xff] }
   0xa   :  { %75 = vmatpush.msra.mxu0 %v44_v2  ;;  %v32_v14 = vld [vmem:[#allocation2 + $0x8] sm:$0xff]  ;;  %v31_v15 = vld [vmem:[#allocation2] sm:$0xff]  ;;  %v63_v23 = vld [vmem:[#allocation2 + $0xf8] sm:$0xff] }
   0xb   :  { %v30_v16 = vld [vmem:[%s332_s0] sm:$0xff]  ;;  %v62_v24 = vld [vmem:[#allocation2 + $0xf0] sm:$0xff]  ;;  %135 = vmatpush.msra.mxu1 %v63_v23  ;;  %v61_v27 = vld [vmem:[#allocation2 + $0xe8] sm:$0xff] }
   0xc   :  { %76 = vmatpush.msra.mxu0 %v43_v3  ;;  %v234_v18 = vpop.eup %233  ;;  %v225_v19 = vld [vmem:[%s334_s2] ss:$0 sm:$0xff]  ;;  %v59_v32 = vld [vmem:[#allocation2 + $0xd8] sm:$0xff]  ;;  %v58_v34 = vld [vmem:[#allocation2 + $0xd0] sm:$0xff] }
   0xd   :  { %v101_v20 = vmul.f32 8.0, %v234_v18  ;;  %136 = vmatpush.msra.mxu1 %v62_v24  ;;  %v60_v29 = vld [vmem:[#allocation2 + $0xe0] sm:$0xff]  ;;  %vm105_vm0 = vweird.f32 %v234_v18  ;;  %v57_v37 = vld [vmem:[#allocation2 + $0xc8] sm:$0xff]  ;;  %v55_v42 = vld [vmem:[#allocation2 + $0xb8] sm:$0xff] }
   0xe   :  { %77 = vmatpush.msra.mxu0 %v42_v4  ;;  %v56_v39 = vld [vmem:[#allocation2 + $0xc0] sm:$0xff]  ;;  %v54_v44 = vld [vmem:[#allocation2 + $0xb0] sm:$0xff]  ;;  %v53_v46 = vld [vmem:[#allocation2 + $0xa8] sm:$0xff] }
   0xf   :  { %v102_v25 = vsub.f32 1.0, %v101_v20  ;;  %137 = vmatpush.msra.mxu1 %v61_v27  ;;  %v52_v48 = vld [vmem:[#allocation2 + $0xa0] sm:$0xff]  ;;  %v51_v50 = vld [vmem:[#allocation2 + $0x98] sm:$0xff]  ;;  %v50_v52 = vld [vmem:[#allocation2 + $0x90] sm:$0xff] }
  0x10   :  { %78 = vmatpush.msra.mxu0 %v41_v5  ;;  %v49_v54 = vld [vmem:[#allocation2 + $0x88] sm:$0xff]  ;;  %v48_v56 = vld [vmem:[#allocation2 + $0x80] sm:$0xff] }
  0x11   :  { %v103_v30 = vmul.f32 %v234_v18, %v102_v25  ;;  %138 = vmatpush.msra.mxu1 %v60_v29  ;;  %v226_v3 = vld [vmem:[%s334_s2 + $0x1] ss:$0 sm:$0xff] }
  0x12   :  { %79 = vmatpush.msra.mxu0 %v40_v6  ;;  %v227_v6 = vld [vmem:[%s334_s2 + $0x2] ss:$0 sm:$0xff] }
  0x13   :  { %v104_v35 = vadd.f32 %v234_v18, %v103_v30  ;;  %139 = vmatpush.msra.mxu1 %v59_v32 }
  0x14   :  { %80 = vmatpush.msra.mxu0 %v39_v7 }
  0x15   :  { %140 = vmatpush.msra.mxu1 %v58_v34  ;;  %v302_v40 = vsel %vm105_vm0, %v234_v18, %v104_v35 }
  0x16   :  { %81 = vmatpush.msra.mxu0 %v38_v8 }
  0x17   :  { %141 = vmatpush.msra.mxu1 %v57_v37  ;;  %v229_v37 = vld [vmem:[%s334_s2 + $0x4] ss:$0 sm:$0xff] }
  0x18   :  { %82 = vmatpush.msra.mxu0 %v37_v9 }
  0x19   :  { %142 = vmatpush.msra.mxu1 %v56_v39 }
  0x1a   :  { %83 = vmatpush.msra.mxu0 %v36_v10  ;;  %v228_v10 = vld [vmem:[%s334_s2 + $0x3] ss:$0 sm:$0xff] }
  0x1b   :  { %143 = vmatpush.msra.mxu1 %v55_v42 }
  0x1c   :  { %84 = vmatpush.msra.mxu0 %v35_v11 }
  0x1d   :  { %144 = vmatpush.msra.mxu1 %v54_v44 }
  0x1e   :  { %85 = vmatpush.msra.mxu0 %v34_v12 }
  0x1f   :  { %145 = vmatpush.msra.mxu1 %v53_v46  ;;  %v232_v46 = vld [vmem:[%s334_s2 + $0x7] ss:$0 sm:$0xff] }
  0x20   :  { %86 = vmatpush.msra.mxu0 %v33_v13 }
  0x21   :  { %146 = vmatpush.msra.mxu1 %v52_v48 }
  0x22   :  { %87 = vmatpush.msra.mxu0 %v32_v14 }
  0x23   :  { %147 = vmatpush.msra.mxu1 %v51_v50 }
  0x24   :  { %88 = vmatpush.msra.mxu0 %v31_v15 }
  0x25   :  { %89 = vmatmul.f32.vlgmr.msra.gmra.mxu0 %v30_v16  ;;  %148 = vmatpush.msra.mxu1 %v50_v52 }
  0x27   :  { %149 = vmatpush.msra.mxu1 %v49_v54 }
  0x29   :  { %150 = vmatpush.msra.mxu1 %v48_v56 }
  0xa2   :  { %v90_v21 = vpop.f32.mrf.mxu0 }
  0xa3   :  { %v91_v22 = vadd.f32 %v225_v19, %v90_v21 }
  0xa5   :  { %v93_v26 = vmax.f32 %v91_v22, 0.0 }
  0xa7   :  { %v94_v28 = vrot.slane %v93_v26, 4 }
  0xa9   :  { %v95_v31 = vadd.f32 %v94_v28, %v93_v26 }
  0xab   :  { %v96_v33 = vrot.slane %v95_v31, 2 }
  0xad   :  { %v97_v36 = vadd.f32 %v96_v33, %v95_v31 }
  0xaf   :  { %v98_v38 = vrot.slane %v97_v36, 1 }
  0xb1   :  { %v99_v41 = vadd.f32 %v98_v38, %v97_v36 }
  0xb3   :  { %v107_v43 = vmul.f32 %v302_v40, %v99_v41 }
  0xb5   :  { %v108_v45 = vsub.f32 %v93_v26, %v107_v43  ;;  %v231_v43 = vld [vmem:[%s334_s2 + $0x6] ss:$0 sm:$0xff] }
  0xb7   :  { %v109_v47 = vmul.f32 %v108_v45, %v108_v45 }
  0xb9   :  { %v110_v49 = vrot.slane %v109_v47, 4 }
  0xbb   :  { %v111_v51 = vadd.f32 %v110_v49, %v109_v47 }
  0xbd   :  { %v112_v53 = vrot.slane %v111_v51, 2 }
  0xbf   :  { %v113_v55 = vadd.f32 %v112_v53, %v111_v51 }
  0xc1   :  { %v114_v57 = vrot.slane %v113_v55, 1 }
  0xc3   :  { %v115_v58 = vadd.f32 %v114_v57, %v113_v55 }
  0xc5   :  { %v116_v59 = vmul.f32 %v115_v58, %v302_v40 }
  0xc7   :  { %v117_v60 = vadd.f32 1e-05, %v116_v59 }
  0xc9   :  { %235 = vrsqrt.f32 %v117_v60  ;;  %vm124_vm2 = vweird.f32 %v117_v60 }
  0xcf   :  { %v236_v61 = vpop.eup %235 }
  0xd0   :  { %v119_v62 = vmul.f32 %v236_v61, %v117_v60  ;;  %vm125_vm1 = vweird.f32 %v236_v61 }
  0xd1   :  { %vm126_vm3 = vmor %vm124_vm2, %vm125_vm1 }
  0xd2   :  { %v120_v63 = vmul.f32 %v236_v61, %v119_v62 }
  0xd4   :  { %v121_v0 = vmul.f32 0.5, %v120_v63 }
  0xd6   :  { %v122_v1 = vsub.f32 1.5, %v121_v0 }
  0xd8   :  { %v123_v2 = vmul.f32 %v236_v61, %v122_v1 }
  0xda   :  { %v127_v4 = vsel %vm126_vm3, %v236_v61, %v123_v2 }
  0xdb   :  { %v128_v5 = vmul.f32 %v127_v4, %v108_v45 }
  0xdd   :  { %v130_v7 = vmul.f32 %v226_v3, %v128_v5 }
  0xdf   :  { %v132_v8 = vadd.f32 %v227_v6, %v130_v7 }
  0xe1   :  { %v133_v9 = vmax.f32 %v132_v8, 0.0 }
  0xe3   :  { %151 = vmatmul.f32.vlgmr.msra.gmra.mxu1 %v133_v9 }
 0x160   :  { %v152_v11 = vpop.f32.mrf.mxu1 }
 0x161   :  { %v153_v12 = vadd.f32 %v228_v10, %v152_v11 }
 0x163   :  { %v155_v13 = vmax.f32 %v153_v12, 0.0 }
 0x165   :  { %v156_v14 = vrot.slane %v155_v13, 4 }
 0x167   :  { %v157_v15 = vadd.f32 %v156_v14, %v155_v13 }
 0x169   :  { %v158_v16 = vrot.slane %v157_v15, 2 }
 0x16b   :  { %v159_v17 = vadd.f32 %v158_v16, %v157_v15 }
 0x16d   :  { %v160_v18 = vrot.slane %v159_v17, 1 }
 0x16f   :  { %v161_v19 = vadd.f32 %v160_v18, %v159_v17 }
 0x171   :  { %v162_v20 = vmul.f32 %v161_v19, %v302_v40 }
 0x173   :  { %v163_v21 = vsub.f32 %v155_v13, %v162_v20 }
 0x175   :  { %v164_v22 = vmul.f32 %v163_v21, %v163_v21 }
 0x177   :  { %v165_v23 = vrot.slane %v164_v22, 4 }
 0x179   :  { %v166_v24 = vadd.f32 %v165_v23, %v164_v22 }
 0x17b   :  { %v167_v25 = vrot.slane %v166_v24, 2 }
 0x17d   :  { %v168_v26 = vadd.f32 %v167_v25, %v166_v24 }
 0x17f   :  { %v169_v27 = vrot.slane %v168_v26, 1 }
 0x181   :  { %v170_v28 = vadd.f32 %v169_v27, %v168_v26 }
 0x183   :  { %v171_v29 = vmul.f32 %v170_v28, %v302_v40  ;;  %v230_v40 = vld [vmem:[%s334_s2 + $0x5] ss:$0 sm:$0xff] }
 0x185   :  { %v172_v30 = vadd.f32 1e-05, %v171_v29 }
 0x187   :  { %237 = vrsqrt.f32 %v172_v30  ;;  %vm179_vm5 = vweird.f32 %v172_v30 }
 0x18d   :  { %v238_v31 = vpop.eup %237 }
 0x18e   :  { %v174_v32 = vmul.f32 %v238_v31, %v172_v30  ;;  %vm180_vm4 = vweird.f32 %v238_v31 }
 0x18f   :  { %vm181_vm6 = vmor %vm179_vm5, %vm180_vm4 }
 0x190   :  { %v175_v33 = vmul.f32 %v238_v31, %v174_v32 }
 0x192   :  { %v176_v34 = vmul.f32 0.5, %v175_v33 }
 0x194   :  { %v177_v35 = vsub.f32 1.5, %v176_v34 }
 0x196   :  { %v178_v36 = vmul.f32 %v238_v31, %v177_v35 }
 0x198   :  { %v182_v38 = vsel %vm181_vm6, %v238_v31, %v178_v36 }
 0x199   :  { %v183_v39 = vmul.f32 %v182_v38, %v163_v21 }
 0x19b   :  { %v185_v41 = vmul.f32 %v229_v37, %v183_v39 }
 0x19d   :  { %v187_v42 = vadd.f32 %v230_v40, %v185_v41 }
 0x19f   :  { %v188_v44 = vmax.f32 %v187_v42, 0.0 }
 0x1a1   :  { %v190_v45 = vmul.f32 %v231_v43, %v188_v44 }
 0x1a3   :  { %191 = vadd.xlane.f32.xlu0 %v190_v45 }
 0x216   :  { %v192_v47 = vpop.xlane.xlu0 %191 }
 0x217   :  { %v194_v48 = vadd.f32 %v232_v46, %v192_v47 }
 0x219   :  { %v220_v49 = vmul.f32 -1.442695, %v194_v48 }
 0x21b   :  { %239 = vpow2.f32 %v220_v49 }
 0x221   :  { %v240_v50 = vpop.eup %239 }
 0x222   :  { %v198_v51 = vadd.f32 1.0, %v240_v50 }
 0x224   :  { %241 = vrcp.f32 %v198_v51  ;;  %v210_v55 = vand.u32 2147483648, %v198_v51  ;;  %v208_v57 = vand.u32 2147483647, %v198_v51  ;;  %vm204_vm8 = vweird.f32 %v198_v51 }
 0x226   :  { %v211_v59 = vor.u32 1.1754944e-38, %v210_v55  ;;  %vm209_vm10 = vcmp.eq.f32.partialorder %v208_v57, 8.507059e+37 }
 0x22a   :  { %v242_v52 = vpop.eup %241 }
 0x22b   :  { %v200_v53 = vmul.f32 %v242_v52, %v198_v51  ;;  %vm205_vm7 = vweird.f32 %v242_v52 }
 0x22c   :  { %vm206_vm9 = vmor %vm204_vm8, %vm205_vm7 }
 0x22d   :  { %v201_v54 = vsub.f32 1.0, %v200_v53 }
 0x22f   :  { %v202_v56 = vmul.f32 %v242_v52, %v201_v54 }
 0x231   :  { %v203_v58 = vadd.f32 %v242_v52, %v202_v56 }
 0x233   :  { %v207_v60 = vsel %vm206_vm9, %v242_v52, %v203_v58 }
 0x234   :  { %v212_v61 = vsel %vm209_vm10, %v211_v59, %v207_v60 }
 0x235   :  { %214 = vst [vmem:[%s335_s3] sm:$0xff] %v212_v61 }
 0x236   :  { %219 = vsyncpa [#allocation3], 1 }

</bundles_post_ra>
